<compile_context>
chip_gen: v5e
topology: v5e:2x2
jax: 0.10.0
libtpu: 0.0.40
codegen_flags: <defaults>
</compile_context>

<pallas_src>
import jax
import jax.numpy as jnp
import numpy as np
from jax.experimental import pallas as pl
from jax.experimental.pallas import tpu as pltpu


def duration_predictor_kernel(
    x_ref, m_ref, w1_ref, w2_ref, ch_ref, wp_ref, bp_ref, o_ref,
):
    """One grid step processes a tile of Bt batch elements in NCW layout.

    x_ref : (Bt, C_in, T)   time on lanes, channels on sublanes
    m_ref : (Bt, 1,    T)
    w1_ref: (F, K*C_in)     conv taps folded into the matmul contraction dim
    w2_ref: (F, K*F)
    ch_ref: (F, 6)          packed [conv1_b, ln1_g, ln1_b, conv2_b, ln2_g, ln2_b]
    wp_ref: (1, F)
    bp_ref: (1, 1)
    o_ref : (Bt, 1, T)      lane-dense output
    """
    Bt, C_in, T = x_ref.shape
    F = w1_ref.shape[0]
    K = w1_ref.shape[1] // C_in
    pad = K // 2
    BtT = Bt * T

    # Parameters loaded once per grid step.
    w1 = w1_ref[...]
    w2 = w2_ref[...]
    wp = wp_ref[...]
    bp = bp_ref[...]
    b1, g1, be1 = ch_ref[:, 0:1], ch_ref[:, 1:2], ch_ref[:, 2:3]
    b2, g2, be2 = ch_ref[:, 3:4], ch_ref[:, 4:5], ch_ref[:, 5:6]

    def cat_time(parts):
        return parts[0] if len(parts) == 1 else jnp.concatenate(parts, axis=1)

    # Flatten the batch tile along the lane (time) axis: every subsequent op is
    # a single wide op over Bt*T lanes (one matmul per conv instead of Bt).
    x_flat = cat_time([x_ref[i] for i in range(Bt)])      # (C_in, Bt*T)
    m_flat = cat_time([m_ref[i] for i in range(Bt)])      # (1,    Bt*T)

    # Position-within-sample index on the flattened lane axis (built by lane
    # concat of one (1, T) iota -> no vector remainder needed).
    iota_t = jax.lax.broadcasted_iota(jnp.int32, (1, T), 1)
    t_in = cat_time([iota_t] * Bt)                          # (1, Bt*T)

    # Per-tap validity masks: implement the conv's 'same' zero padding and zero
    # out values that rolled across a sample boundary.  Hoisted and shared by
    # both convs (JAX does not CSE broadcast_in_dim).
    tap_valid = []
    for k in range(K):
        d = k - pad
        if d == 0:
            tap_valid.append(None)
        else:
            tap_valid.append(jnp.logical_and(t_in + d >= 0, t_in + d < T))

    def shifted_stack(h):
        # (C, Bt*T) -> (K*C, Bt*T): K time-shifted views stacked along channels
        # so the whole conv is one MXU push.  Shifts on the XLU via pltpu.roll.
        taps = []
        for k in range(K):
            d = k - pad
            if d == 0:
                taps.append(h)
            else:
                rolled = pltpu.roll(h, shift=(-d) % BtT, axis=1)
                taps.append(jnp.where(tap_valid[k], rolled, 0.0))
        return taps[0] if K == 1 else jnp.concatenate(taps, axis=0)

    def channel_layernorm(h, gamma, beta, eps=1e-4):
        # GlowTTS LayerNorm: normalize over channels (sublane axis) -> XLU
        # reduce; rsqrt goes to the EUP slot.
        mean = jnp.mean(h, axis=0, keepdims=True)
        var = jnp.mean(jnp.square(h - mean), axis=0, keepdims=True)
        return (h - mean) * jax.lax.rsqrt(var + eps) * gamma + beta

    # --- Conv1DBlock 1: conv -> relu -> channel LayerNorm -> dropout(identity) ---
    h = jnp.dot(w1, shifted_stack(x_flat * m_flat),
                preferred_element_type=jnp.float32) + b1
    h = jnp.maximum(h, 0.0)
    h = channel_layernorm(h, g1, be1)
    # TODO(synk): dropout is identity (eval-mode); training-mode stochastic dropout not implemented.

    # --- Conv1DBlock 2 ---
    h = jnp.dot(w2, shifted_stack(h * m_flat),
                preferred_element_type=jnp.float32) + b2
    h = jnp.maximum(h, 0.0)
    h = channel_layernorm(h, g2, be2)

    # --- proj: 1x1 conv == (1, F) x (F, Bt*T) matmul; lane-dense (1, Bt*T) ---
    out = jnp.dot(wp, h * m_flat, preferred_element_type=jnp.float32) + bp

    # Lane-aligned static slices back to per-sample (1, T) rows.
    for i in range(Bt):
        o_ref[i] = out[:, i * T:(i + 1) * T].astype(o_ref.dtype)


def duration_predictor(x_bct, mask_b1t, params, *, block_b=None):
    """x_bct: (B, C_in, T) float32 (torch NCW); mask_b1t: (B, 1, T). Returns (B, 1, T)."""
    B, C_in, T = x_bct.shape
    F, _, K = params["conv1_w"].shape

    # Batch tile: several samples per grid step (amortizes the ~600-cycle
    # per-step pipeline overhead and widens the matmuls); with larger B there
    # are still multiple grid steps so the "parallel" batch axis can shard
    # across TensorCores on v7x.
    if block_b is None:
        block_b = min(B, 8)
        while B % block_b:
            block_b -= 1
    grid = (B // block_b,)

    # Fold the K conv taps into the matmul contraction: W[f, k*C + c] = w[f, c, k].
    w1f = jnp.transpose(params["conv1_w"], (0, 2, 1)).reshape(F, K * C_in)
    w2f = jnp.transpose(params["conv2_w"], (0, 2, 1)).reshape(F, K * F)
    # Pack all per-channel vectors into one operand (fewer tiny DMAs / operands).
    ch = jnp.stack(
        [params["conv1_b"], params["ln1_g"], params["ln1_b"],
         params["conv2_b"], params["ln2_g"], params["ln2_b"]], axis=1)       # (F, 6)
    wpr = params["proj_w"].reshape(1, F)
    bpr = params["proj_b"].reshape(1, 1)

    def rep(shape):
        n = len(shape)
        return pl.BlockSpec(shape, lambda b, n=n: (0,) * n)

    # NOTE: T is kept un-tiled (full extent per block). Tiling T for very long
    # sequences would need a K//2 halo on the conv inputs to stay correct.
    # T being a multiple of 128 keeps all lane concats/slices aligned.
    grid_spec = pltpu.PrefetchScalarGridSpec(
        num_scalar_prefetch=0,
        grid=grid,
        in_specs=[
            pl.BlockSpec((block_b, C_in, T), lambda b: (b, 0, 0)),    # x (NCW)
            pl.BlockSpec((block_b, 1, T), lambda b: (b, 0, 0)),       # mask
            rep((F, K * C_in)),                                        # conv1 w (folded)
            rep((F, K * F)),                                           # conv2 w (folded)
            rep((F, 6)),                                               # packed channel params
            rep((1, F)), rep((1, 1)),                                  # proj w / b
        ],
        out_specs=pl.BlockSpec((block_b, 1, T), lambda b: (b, 0, 0)),  # lane-dense output
    )

    flops = 2 * B * T * (K * C_in * F + K * F * F + F)
    bytes_accessed = 4 * (
        B * C_in * T + 2 * B * T
        + F * K * C_in + F * K * F + 6 * F + F + 1
    )
    cost = pl.CostEstimate(
        flops=int(flops),
        transcendentals=int(2 * B * T),           # two rsqrt per (sample, time)
        bytes_accessed=int(bytes_accessed),
    )

    return pl.pallas_call(
        duration_predictor_kernel,
        out_shape=jax.ShapeDtypeStruct((B, 1, T), jnp.float32),
        grid_spec=grid_spec,
        compiler_params=pltpu.CompilerParams(dimension_semantics=("parallel",)),
        cost_estimate=cost,
    )(x_bct, mask_b1t, w1f, w2f, ch, wpr, bpr)


# ---------------- pure-JAX reference (for correctness check) ----------------
def ref_forward(x_bct, mask_b1t, p):
    def conv1d(h, w_oik, b):
        pad = w_oik.shape[-1] // 2
        y = jax.lax.conv_general_dilated(
            h, w_oik, window_strides=(1,), padding=[(pad, pad)],
            dimension_numbers=("NCH", "OIH", "NCH"))
        return y + b.reshape(1, -1, 1)

    def ln(h, g, b, eps=1e-4):
        mean = jnp.mean(h, axis=1, keepdims=True)
        var = jnp.mean(jnp.square(h - mean), axis=1, keepdims=True)
        return (h - mean) * jax.lax.rsqrt(var + eps) * g.reshape(1, -1, 1) + b.reshape(1, -1, 1)

    h = conv1d(x_bct * mask_b1t, p["conv1_w"], p["conv1_b"])
    h = jnp.maximum(h, 0.0)
    h = ln(h, p["ln1_g"], p["ln1_b"])
    h = conv1d(h * mask_b1t, p["conv2_w"], p["conv2_b"])
    h = jnp.maximum(h, 0.0)
    h = ln(h, p["ln2_g"], p["ln2_b"])
    return conv1d(h * mask_b1t, p["proj_w"], p["proj_b"])


if __name__ == "__main__":
    key = jax.random.PRNGKey(0)
    # in_channels=16, filter_channels=32, filter_size=3, T=128 (time on lanes)
    B, C_in, F, K, T = 2, 16, 32, 3, 128

    keys = jax.random.split(key, 12)
    s = 0.1
    params = {
        "conv1_w": s * jax.random.normal(keys[0], (F, C_in, K), jnp.float32),   # torch (O, I, K)
        "conv1_b": s * jax.random.normal(keys[1], (F,), jnp.float32),
        "ln1_g": 1.0 + s * jax.random.normal(keys[2], (F,), jnp.float32),
        "ln1_b": s * jax.random.normal(keys[3], (F,), jnp.float32),
        "conv2_w": s * jax.random.normal(keys[4], (F, F, K), jnp.float32),
        "conv2_b": s * jax.random.normal(keys[5], (F,), jnp.float32),
        "ln2_g": 1.0 + s * jax.random.normal(keys[6], (F,), jnp.float32),
        "ln2_b": s * jax.random.normal(keys[7], (F,), jnp.float32),
        "proj_w": s * jax.random.normal(keys[8], (1, F, 1), jnp.float32),
        "proj_b": s * jax.random.normal(keys[9], (1,), jnp.float32),
    }

    x = jax.random.normal(keys[10], (B, C_in, T), jnp.float32)
    lengths = jnp.array([T, T - 37])
    mask = (jnp.arange(T)[None, None, :] < lengths[:, None, None]).astype(jnp.float32)  # (B, 1, T)

    out = duration_predictor(x, mask, params)
    out = jax.block_until_ready(out)
    assert out.shape == (B, 1, T)

    ref = ref_forward(x, mask, params)
    np.testing.assert_allclose(np.asarray(out), np.asarray(ref), rtol=1e-4, atol=1e-4)

    print("KERNEL_OK")
</pallas_src>

<mosaic_0001>
module attributes {stable_mosaic.version = 11 : i64} {
  func.func @duration_predictor_kernel(%arg0: i32, %arg1: memref<2x16x128xf32, #tpu.memory_space<vmem>>, %arg2: memref<2x1x128xf32, #tpu.memory_space<vmem>>, %arg3: memref<32x48xf32, #tpu.memory_space<vmem>>, %arg4: memref<32x96xf32, #tpu.memory_space<vmem>>, %arg5: memref<32x6xf32, #tpu.memory_space<vmem>>, %arg6: memref<1x32xf32, #tpu.memory_space<vmem>>, %arg7: memref<1x1xf32, #tpu.memory_space<vmem>>, %arg8: memref<2x1x128xf32, #tpu.memory_space<vmem>>) attributes {dimension_semantics = [#tpu.dimension_semantics<parallel>], iteration_bounds = array<i64: 1>, scalar_prefetch = 0 : i64, scratch_operands = 0 : i64, tpu.core_type = #tpu.core_type<tc>, window_params = [{transform_indices = @transform_0, window_bounds = array<i64: 2, 16, 128>}, {transform_indices = @transform_1, window_bounds = array<i64: 2, 1, 128>}, {pipeline_mode = #tpu.pipeline_mode<synchronous>, transform_indices = @transform_2, window_bounds = array<i64: 32, 48>}, {pipeline_mode = #tpu.pipeline_mode<synchronous>, transform_indices = @transform_3, window_bounds = array<i64: 32, 96>}, {pipeline_mode = #tpu.pipeline_mode<synchronous>, transform_indices = @transform_4, window_bounds = array<i64: 32, 6>}, {pipeline_mode = #tpu.pipeline_mode<synchronous>, transform_indices = @transform_5, window_bounds = array<i64: 1, 32>}, {pipeline_mode = #tpu.pipeline_mode<synchronous>, transform_indices = @transform_6, window_bounds = array<i64: 1, 1>}, {transform_indices = @transform_7, window_bounds = array<i64: 2, 1, 128>}]} {
    %c0 = arith.constant 0 : index
    %c0_0 = arith.constant 0 : index
    %0 = vector.load %arg3[%c0, %c0_0] : memref<32x48xf32, #tpu.memory_space<vmem>>, vector<32x48xf32>
    %c0_1 = arith.constant 0 : index
    %c0_2 = arith.constant 0 : index
    %1 = vector.load %arg4[%c0_1, %c0_2] : memref<32x96xf32, #tpu.memory_space<vmem>>, vector<32x96xf32>
    %c0_3 = arith.constant 0 : index
    %c0_4 = arith.constant 0 : index
    %2 = vector.load %arg6[%c0_3, %c0_4] : memref<1x32xf32, #tpu.memory_space<vmem>>, vector<1x32xf32>
    %c0_5 = arith.constant 0 : index
    %c0_6 = arith.constant 0 : index
    %3 = vector.load %arg7[%c0_5, %c0_6] : memref<1x1xf32, #tpu.memory_space<vmem>>, vector<1x1xf32>
    %c0_7 = arith.constant 0 : index
    %c0_8 = arith.constant 0 : index
    %4 = vector.load %arg5[%c0_7, %c0_8] : memref<32x6xf32, #tpu.memory_space<vmem>>, vector<32x1xf32>
    %c0_9 = arith.constant 0 : index
    %c1 = arith.constant 1 : index
    %5 = vector.load %arg5[%c0_9, %c1] : memref<32x6xf32, #tpu.memory_space<vmem>>, vector<32x1xf32>
    %c0_10 = arith.constant 0 : index
    %c2 = arith.constant 2 : index
    %6 = vector.load %arg5[%c0_10, %c2] : memref<32x6xf32, #tpu.memory_space<vmem>>, vector<32x1xf32>
    %c0_11 = arith.constant 0 : index
    %c3 = arith.constant 3 : index
    %7 = vector.load %arg5[%c0_11, %c3] : memref<32x6xf32, #tpu.memory_space<vmem>>, vector<32x1xf32>
    %c0_12 = arith.constant 0 : index
    %c4 = arith.constant 4 : index
    %8 = vector.load %arg5[%c0_12, %c4] : memref<32x6xf32, #tpu.memory_space<vmem>>, vector<32x1xf32>
    %c0_13 = arith.constant 0 : index
    %c5 = arith.constant 5 : index
    %9 = vector.load %arg5[%c0_13, %c5] : memref<32x6xf32, #tpu.memory_space<vmem>>, vector<32x1xf32>
    %c0_14 = arith.constant 0 : index
    %c0_15 = arith.constant 0 : index
    %c0_16 = arith.constant 0 : index
    %10 = vector.load %arg1[%c0_14, %c0_15, %c0_16] : memref<2x16x128xf32, #tpu.memory_space<vmem>>, vector<1x16x128xf32>
    %11 = vector.shape_cast %10 : vector<1x16x128xf32> to vector<16x128xf32>
    %c1_17 = arith.constant 1 : index
    %c0_18 = arith.constant 0 : index
    %c0_19 = arith.constant 0 : index
    %12 = vector.load %arg1[%c1_17, %c0_18, %c0_19] : memref<2x16x128xf32, #tpu.memory_space<vmem>>, vector<1x16x128xf32>
    %13 = vector.shape_cast %12 : vector<1x16x128xf32> to vector<16x128xf32>
    %14 = tpu.concatenate %11, %13 in 1 : vector<16x128xf32>, vector<16x128xf32> -> vector<16x256xf32>
    %c0_20 = arith.constant 0 : index
    %c0_21 = arith.constant 0 : index
    %c0_22 = arith.constant 0 : index
    %15 = vector.load %arg2[%c0_20, %c0_21, %c0_22] : memref<2x1x128xf32, #tpu.memory_space<vmem>>, vector<1x1x128xf32>
    %16 = vector.shape_cast %15 : vector<1x1x128xf32> to vector<1x128xf32>
    %c1_23 = arith.constant 1 : index
    %c0_24 = arith.constant 0 : index
    %c0_25 = arith.constant 0 : index
    %17 = vector.load %arg2[%c1_23, %c0_24, %c0_25] : memref<2x1x128xf32, #tpu.memory_space<vmem>>, vector<1x1x128xf32>
    %18 = vector.shape_cast %17 : vector<1x1x128xf32> to vector<1x128xf32>
    %19 = tpu.concatenate %16, %18 in 1 : vector<1x128xf32>, vector<1x128xf32> -> vector<1x256xf32>
    %20 = tpu.iota {dimensions = array<i32: 1>} : vector<1x128xi32>
    %21 = tpu.concatenate %20, %20 in 1 : vector<1x128xi32>, vector<1x128xi32> -> vector<1x256xi32>
    %c-1_i32 = arith.constant -1 : i32
    %22 = vector.broadcast %c-1_i32 : i32 to vector<1x256xi32>
    %23 = arith.addi %21, %22 : vector<1x256xi32>
    %c0_i32 = arith.constant 0 : i32
    %24 = vector.broadcast %c0_i32 : i32 to vector<1x256xi32>
    %25 = arith.cmpi sge, %23, %24 : vector<1x256xi32>
    %c-1_i32_26 = arith.constant -1 : i32
    %26 = vector.broadcast %c-1_i32_26 : i32 to vector<1x256xi32>
    %27 = arith.addi %21, %26 : vector<1x256xi32>
    %c128_i32 = arith.constant 128 : i32
    %28 = vector.broadcast %c128_i32 : i32 to vector<1x256xi32>
    %29 = arith.cmpi slt, %27, %28 : vector<1x256xi32>
    %30 = arith.andi %25, %29 : vector<1x256xi1>
    %c1_i32 = arith.constant 1 : i32
    %31 = vector.broadcast %c1_i32 : i32 to vector<1x256xi32>
    %32 = arith.addi %21, %31 : vector<1x256xi32>
    %c0_i32_27 = arith.constant 0 : i32
    %33 = vector.broadcast %c0_i32_27 : i32 to vector<1x256xi32>
    %34 = arith.cmpi sge, %32, %33 : vector<1x256xi32>
    %c1_i32_28 = arith.constant 1 : i32
    %35 = vector.broadcast %c1_i32_28 : i32 to vector<1x256xi32>
    %36 = arith.addi %21, %35 : vector<1x256xi32>
    %c128_i32_29 = arith.constant 128 : i32
    %37 = vector.broadcast %c128_i32_29 : i32 to vector<1x256xi32>
    %38 = arith.cmpi slt, %36, %37 : vector<1x256xi32>
    %39 = arith.andi %34, %38 : vector<1x256xi1>
    %40 = vector.broadcast %19 : vector<1x256xf32> to vector<16x256xf32>
    %41 = arith.mulf %14, %40 : vector<16x256xf32>
    %c1_i32_30 = arith.constant 1 : i32
    %42 = tpu.dynamic_rotate %41 by %c1_i32_30 dim 1 : vector<16x256xf32>, i32 -> vector<16x256xf32>
    %cst = arith.constant 0.000000e+00 : f32
    %43 = vector.shape_cast %30 : vector<1x256xi1> to vector<1x256xi1>
    %44 = vector.broadcast %43 : vector<1x256xi1> to vector<16x256xi1>
    %45 = vector.broadcast %cst : f32 to vector<16x256xf32>
    %46 = arith.select %44, %42, %45 : vector<16x256xi1>, vector<16x256xf32>
    %c255_i32 = arith.constant 255 : i32
    %47 = tpu.dynamic_rotate %41 by %c255_i32 dim 1 : vector<16x256xf32>, i32 -> vector<16x256xf32>
    %cst_31 = arith.constant 0.000000e+00 : f32
    %48 = vector.shape_cast %39 : vector<1x256xi1> to vector<1x256xi1>
    %49 = vector.broadcast %48 : vector<1x256xi1> to vector<16x256xi1>
    %50 = vector.broadcast %cst_31 : f32 to vector<16x256xf32>
    %51 = arith.select %49, %47, %50 : vector<16x256xi1>, vector<16x256xf32>
    %52 = tpu.concatenate %46, %41, %51 in 0 : vector<16x256xf32>, vector<16x256xf32>, vector<16x256xf32> -> vector<48x256xf32>
    %cst_32 = arith.constant dense<0.000000e+00> : vector<32x256xf32>
    %53 = tpu.matmul %0, %52, %cst_32 {dimension_numbers = #tpu.dot_dimension_numbers<[1], [0], [0], [1], [0, 0, 1, 1], [], []>} : vector<32x48xf32>, vector<48x256xf32>, vector<32x256xf32> -> vector<32x256xf32>
    %54 = vector.broadcast %4 : vector<32x1xf32> to vector<32x256xf32>
    %55 = arith.addf %53, %54 : vector<32x256xf32>
    %cst_33 = arith.constant 0.000000e+00 : f32
    %56 = vector.broadcast %cst_33 : f32 to vector<32x256xf32>
    %57 = arith.maximumf %55, %56 : vector<32x256xf32>
    %cst_34 = arith.constant dense<0.000000e+00> : vector<256xf32>
    %58 = vector.multi_reduction <add>, %57, %cst_34 [0] : vector<32x256xf32> to vector<256xf32>
    %59 = vector.shape_cast %58 : vector<256xf32> to vector<1x256xf32>
    %cst_35 = arith.constant 3.200000e+01 : f32
    %60 = vector.broadcast %cst_35 : f32 to vector<1x256xf32>
    %61 = arith.divf %59, %60 : vector<1x256xf32>
    %62 = vector.broadcast %61 : vector<1x256xf32> to vector<32x256xf32>
    %63 = arith.subf %57, %62 : vector<32x256xf32>
    %64 = arith.mulf %63, %63 : vector<32x256xf32>
    %cst_36 = arith.constant dense<0.000000e+00> : vector<256xf32>
    %65 = vector.multi_reduction <add>, %64, %cst_36 [0] : vector<32x256xf32> to vector<256xf32>
    %66 = vector.shape_cast %65 : vector<256xf32> to vector<1x256xf32>
    %cst_37 = arith.constant 3.200000e+01 : f32
    %67 = vector.broadcast %cst_37 : f32 to vector<1x256xf32>
    %68 = arith.divf %66, %67 : vector<1x256xf32>
    %69 = vector.broadcast %61 : vector<1x256xf32> to vector<32x256xf32>
    %70 = arith.subf %57, %69 : vector<32x256xf32>
    %cst_38 = arith.constant 9.99999974E-5 : f32
    %71 = vector.broadcast %cst_38 : f32 to vector<1x256xf32>
    %72 = arith.addf %68, %71 : vector<1x256xf32>
    %73 = math.rsqrt %72 : vector<1x256xf32>
    %74 = vector.broadcast %73 : vector<1x256xf32> to vector<32x256xf32>
    %75 = arith.mulf %70, %74 : vector<32x256xf32>
    %76 = vector.broadcast %5 : vector<32x1xf32> to vector<32x256xf32>
    %77 = arith.mulf %75, %76 : vector<32x256xf32>
    %78 = vector.broadcast %6 : vector<32x1xf32> to vector<32x256xf32>
    %79 = arith.addf %77, %78 : vector<32x256xf32>
    %80 = vector.broadcast %19 : vector<1x256xf32> to vector<32x256xf32>
    %81 = arith.mulf %79, %80 : vector<32x256xf32>
    %c1_i32_39 = arith.constant 1 : i32
    %82 = tpu.dynamic_rotate %81 by %c1_i32_39 dim 1 : vector<32x256xf32>, i32 -> vector<32x256xf32>
    %cst_40 = arith.constant 0.000000e+00 : f32
    %83 = vector.shape_cast %30 : vector<1x256xi1> to vector<1x256xi1>
    %84 = vector.broadcast %83 : vector<1x256xi1> to vector<32x256xi1>
    %85 = vector.broadcast %cst_40 : f32 to vector<32x256xf32>
    %86 = arith.select %84, %82, %85 : vector<32x256xi1>, vector<32x256xf32>
    %c255_i32_41 = arith.constant 255 : i32
    %87 = tpu.dynamic_rotate %81 by %c255_i32_41 dim 1 : vector<32x256xf32>, i32 -> vector<32x256xf32>
    %cst_42 = arith.constant 0.000000e+00 : f32
    %88 = vector.shape_cast %39 : vector<1x256xi1> to vector<1x256xi1>
    %89 = vector.broadcast %88 : vector<1x256xi1> to vector<32x256xi1>
    %90 = vector.broadcast %cst_42 : f32 to vector<32x256xf32>
    %91 = arith.select %89, %87, %90 : vector<32x256xi1>, vector<32x256xf32>
    %92 = tpu.concatenate %86, %81, %91 in 0 : vector<32x256xf32>, vector<32x256xf32>, vector<32x256xf32> -> vector<96x256xf32>
    %cst_43 = arith.constant dense<0.000000e+00> : vector<32x256xf32>
    %93 = tpu.matmul %1, %92, %cst_43 {dimension_numbers = #tpu.dot_dimension_numbers<[1], [0], [0], [1], [0, 0, 1, 1], [], []>} : vector<32x96xf32>, vector<96x256xf32>, vector<32x256xf32> -> vector<32x256xf32>
    %94 = vector.broadcast %7 : vector<32x1xf32> to vector<32x256xf32>
    %95 = arith.addf %93, %94 : vector<32x256xf32>
    %cst_44 = arith.constant 0.000000e+00 : f32
    %96 = vector.broadcast %cst_44 : f32 to vector<32x256xf32>
    %97 = arith.maximumf %95, %96 : vector<32x256xf32>
    %cst_45 = arith.constant dense<0.000000e+00> : vector<256xf32>
    %98 = vector.multi_reduction <add>, %97, %cst_45 [0] : vector<32x256xf32> to vector<256xf32>
    %99 = vector.shape_cast %98 : vector<256xf32> to vector<1x256xf32>
    %cst_46 = arith.constant 3.200000e+01 : f32
    %100 = vector.broadcast %cst_46 : f32 to vector<1x256xf32>
    %101 = arith.divf %99, %100 : vector<1x256xf32>
    %102 = vector.broadcast %101 : vector<1x256xf32> to vector<32x256xf32>
    %103 = arith.subf %97, %102 : vector<32x256xf32>
    %104 = arith.mulf %103, %103 : vector<32x256xf32>
    %cst_47 = arith.constant dense<0.000000e+00> : vector<256xf32>
    %105 = vector.multi_reduction <add>, %104, %cst_47 [0] : vector<32x256xf32> to vector<256xf32>
    %106 = vector.shape_cast %105 : vector<256xf32> to vector<1x256xf32>
    %cst_48 = arith.constant 3.200000e+01 : f32
    %107 = vector.broadcast %cst_48 : f32 to vector<1x256xf32>
    %108 = arith.divf %106, %107 : vector<1x256xf32>
    %109 = vector.broadcast %101 : vector<1x256xf32> to vector<32x256xf32>
    %110 = arith.subf %97, %109 : vector<32x256xf32>
    %cst_49 = arith.constant 9.99999974E-5 : f32
    %111 = vector.broadcast %cst_49 : f32 to vector<1x256xf32>
    %112 = arith.addf %108, %111 : vector<1x256xf32>
    %113 = math.rsqrt %112 : vector<1x256xf32>
    %114 = vector.broadcast %113 : vector<1x256xf32> to vector<32x256xf32>
    %115 = arith.mulf %110, %114 : vector<32x256xf32>
    %116 = vector.broadcast %8 : vector<32x1xf32> to vector<32x256xf32>
    %117 = arith.mulf %115, %116 : vector<32x256xf32>
    %118 = vector.broadcast %9 : vector<32x1xf32> to vector<32x256xf32>
    %119 = arith.addf %117, %118 : vector<32x256xf32>
    %120 = vector.broadcast %19 : vector<1x256xf32> to vector<32x256xf32>
    %121 = arith.mulf %119, %120 : vector<32x256xf32>
    %cst_50 = arith.constant dense<0.000000e+00> : vector<1x256xf32>
    %122 = tpu.matmul %2, %121, %cst_50 {dimension_numbers = #tpu.dot_dimension_numbers<[1], [0], [0], [1], [0, 0, 1, 1], [], []>} : vector<1x32xf32>, vector<32x256xf32>, vector<1x256xf32> -> vector<1x256xf32>
    %123 = vector.broadcast %3 : vector<1x1xf32> to vector<1x256xf32>
    %124 = arith.addf %122, %123 : vector<1x256xf32>
    %125 = vector.extract_strided_slice %124 {offsets = [0, 0], sizes = [1, 128], strides = [1, 1]} : vector<1x256xf32> to vector<1x128xf32>
    %c0_51 = arith.constant 0 : index
    %c0_52 = arith.constant 0 : index
    %c0_53 = arith.constant 0 : index
    %126 = vector.load %arg8[%c0_51, %c0_52, %c0_53] : memref<2x1x128xf32, #tpu.memory_space<vmem>>, vector<1x1x128xf32>
    %127 = vector.shape_cast %126 : vector<1x1x128xf32> to vector<1x128xf32>
    %128 = vector.shape_cast %125 : vector<1x128xf32> to vector<1x1x128xf32>
    tpu.vector_store %arg8[%c0_51, %c0_52, %c0_53], %128 {strides = array<i32>} : memref<2x1x128xf32, #tpu.memory_space<vmem>>, vector<1x1x128xf32>,
    %129 = vector.extract_strided_slice %124 {offsets = [0, 128], sizes = [1, 128], strides = [1, 1]} : vector<1x256xf32> to vector<1x128xf32>
    %c1_54 = arith.constant 1 : index
    %c0_55 = arith.constant 0 : index
    %c0_56 = arith.constant 0 : index
    %130 = vector.load %arg8[%c1_54, %c0_55, %c0_56] : memref<2x1x128xf32, #tpu.memory_space<vmem>>, vector<1x1x128xf32>
    %131 = vector.shape_cast %130 : vector<1x1x128xf32> to vector<1x128xf32>
    %132 = vector.shape_cast %129 : vector<1x128xf32> to vector<1x1x128xf32>
    tpu.vector_store %arg8[%c1_54, %c0_55, %c0_56], %132 {strides = array<i32>} : memref<2x1x128xf32, #tpu.memory_space<vmem>>, vector<1x1x128xf32>,
    return
  }
  func.func @transform_0(%arg0: i32) -> (i32, i32, i32) {
    %c0_i32 = arith.constant 0 : i32
    %c0_i32_0 = arith.constant 0 : i32
    %c0_i32_1 = arith.constant 0 : i32
    return %arg0, %c0_i32, %c0_i32_0 : i32, i32, i32
  }
  func.func @transform_1(%arg0: i32) -> (i32, i32, i32) {
    %c0_i32 = arith.constant 0 : i32
    %c0_i32_0 = arith.constant 0 : i32
    %c0_i32_1 = arith.constant 0 : i32
    return %arg0, %c0_i32, %c0_i32_0 : i32, i32, i32
  }
  func.func @transform_2(%arg0: i32) -> (i32, i32) {
    %c0_i32 = arith.constant 0 : i32
    %c0_i32_0 = arith.constant 0 : i32
    %c0_i32_1 = arith.constant 0 : i32
    return %c0_i32, %c0_i32_0 : i32, i32
  }
  func.func @transform_3(%arg0: i32) -> (i32, i32) {
    %c0_i32 = arith.constant 0 : i32
    %c0_i32_0 = arith.constant 0 : i32
    %c0_i32_1 = arith.constant 0 : i32
    return %c0_i32, %c0_i32_0 : i32, i32
  }
  func.func @transform_4(%arg0: i32) -> (i32, i32) {
    %c0_i32 = arith.constant 0 : i32
    %c0_i32_0 = arith.constant 0 : i32
    %c0_i32_1 = arith.constant 0 : i32
    return %c0_i32, %c0_i32_0 : i32, i32
  }
  func.func @transform_5(%arg0: i32) -> (i32, i32) {
    %c0_i32 = arith.constant 0 : i32
    %c0_i32_0 = arith.constant 0 : i32
    %c0_i32_1 = arith.constant 0 : i32
    return %c0_i32, %c0_i32_0 : i32, i32
  }
  func.func @transform_6(%arg0: i32) -> (i32, i32) {
    %c0_i32 = arith.constant 0 : i32
    %c0_i32_0 = arith.constant 0 : i32
    %c0_i32_1 = arith.constant 0 : i32
    return %c0_i32, %c0_i32_0 : i32, i32
  }
  func.func @transform_7(%arg0: i32) -> (i32, i32, i32) {
    %c0_i32 = arith.constant 0 : i32
    %c0_i32_0 = arith.constant 0 : i32
    %c0_i32_1 = arith.constant 0 : i32
    return %arg0, %c0_i32, %c0_i32_0 : i32, i32, i32
  }
}

</mosaic_0001>

<bundles_post_ra>
// kernel: tpu_custom_call.1
= control target key start
LH: loop header
LB: loop body
LE: loop exit
PB: predicated region body
PF: predicated region fallthrough
CT: control target
= control target key end

     0   :  { %s1316_s0 = inlined_call_operand.vmem [shape: f32[2,16,128], index: 0, kind: input, shape index: {}]   ;;  %s1317_s1 = inlined_call_operand.vmem [shape: f32[2,1,128], index: 1, kind: input, shape index: {}]   ;;  %s1318_s2 = inlined_call_operand.hbm [shape: f32[32,48], index: 2, kind: input, shape index: {}]   ;;  %s1319_s3 = inlined_call_operand.hbm [shape: f32[32,96], index: 3, kind: input, shape index: {}]   ;;  %s1320_s4 = inlined_call_operand.vmem [shape: f32[32,6], index: 4, kind: input, shape index: {}]   ;;  %s1321_s5 = inlined_call_operand.vmem [shape: f32[1,32], index: 5, kind: input, shape index: {}]   ;;  %s1322_s6 = inlined_call_operand.<no memory space> [shape: f32[1,1], index: 6, kind: input, shape index: {}]   ;;  %s1323_s7 = inlined_call_operand.hbm [shape: f32[2,1,128], index: 7, kind: output, shape index: {}]  }
   0x1   :  { %v12_v0 = vstv %s1322_s6 }
   0x2   :  { %13 = vst [vmem:[#allocation2] sm:$0x1] %v12_v0 }
   0x3   :  { %14 = vsyncpa [#allocation4], 0 }
   0x4   :  { %15 = vsyncpa [#allocation7], 0 }
   0x5   :  { %16 = vsyncpa [#allocation5], 0  ;;  %s25_s28 = sshll.u32 %s1318_s2, 4  ;;  %s929_s29 = smov [#allocation3]   ;;  %s26_s28 = int_to_ptr.hbm [resolvable:$true] %s25_s28 }
   0x6   :  { %s27_s30 = sshll.u32 %s929_s29, 4  ;;  %s38_s10 = sshll.u32 %s1319_s3, 4  ;;  %s28_s30 = int_to_ptr.vmem [resolvable:$true] %s27_s30  ;;  %s39_s10 = int_to_ptr.hbm [resolvable:$true] %s38_s10 }
   0x7   :  { %s930_s11 = smov 128   ;;  %s931_s12 = smov 8  }
   0x8   :  { %33 = dma.hbm_to_vmem [thread:$0]  %s26_s28, 512, %s28_s30, [#allocation4], %s930_s11, %s930_s11, %s931_s12  }
   0x9   :  { %s932_s6 = smov [#allocation6]  }
   0xa   :  { %s40_s13 = sshll.u32 %s932_s6, 4  ;;  %s41_s13 = int_to_ptr.vmem [resolvable:$true] %s40_s13 }
   0xb   :  { %46 = dma.hbm_to_vmem [thread:$0]  %s39_s10, 512, %s41_s13, [#allocation7], %s930_s11, %s930_s11, %s931_s12  }
   0xc   :  { %923 = dma.done.wait [#allocation4], 512  }
   0xd   :  { %924 = vsyncadd [#allocation4], 4294966784 }
   0xe   :  { %925 = dma.done.wait [#allocation7], 512  }
   0xf   :  { %926 = vsyncadd [#allocation7], 4294966784  ;;  %v76_v1 = vld [vmem:[%s1316_s0 + $0x8] sm:$0xff]  ;;  %v999_v2 = vld [vmem:[%s1317_s1] ss:$0 sm:$0xff]  ;;  %s933_s18 = smov 127   ;;  %v83_v12 = vlaneseq }
  0x10   :  { %v75_v3 = vld [vmem:[%s1316_s0] sm:$0xff]  ;;  %v97_v4 = vmul.f32 %v999_v2, %v76_v1  ;;  %v762_v7 = vld [vmem:[%s1316_s0 + $0x18] sm:$0xff]  ;;  %v761_v8 = vld [vmem:[%s1316_s0 + $0x10] sm:$0xff]  ;;  %s934_s25 = smov 1   ;;  %v935_v11 = vmov 0   ;;  %v936_v41 = vmov 2  }
  0x11   :  { %v95_v5 = vmul.f32 %v999_v2, %v75_v3  ;;  %v1011_v6 = vld [vmem:[%s1317_s1 + $0x1] ss:$0 sm:$0xff]  ;;  %822 = vset.pattern.permute.xlu0 %v935_v11  ;;  %823 = vset.pattern.permute.xlu1 %v935_v11  ;;  %v1030_v13 = vand.u32 127, %v83_v12  ;;  %v1038_v21 = vld [vmem:[%s1320_s4 + $0x8] sm:$0xff]  ;;  %v1066_v31 = vld [vmem:[%s1320_s4 + $0x10] sm:$0xff]  ;;  %vm159_vm6 = vcmask 392192  }
  0x12   :  { %121 = vrot.lane.b32.xlu0 %v97_v4, %s933_s18  ;;  %101 = vrot.lane.b32.xlu2 %v97_v4, %s934_s25  ;;  %v98_v9 = vmul.f32 %v1011_v6, %v762_v7  ;;  %v96_v10 = vmul.f32 %v1011_v6, %v761_v8  ;;  %v1071_v32 = vld [vmem:[%s1320_s4] sm:$0xff]  ;;  %v1095_v43 = vld [vmem:[%s1320_s4 + $0x18] sm:$0xff]  ;;  %v937_v44 = vmov 1   ;;  %v62_v45 = vld [vmem:[#allocation3 + $0x8] sm:$0xff]  ;;  %v938_v55 = vmov 32.0   ;;  %s942_s2 = smov [#allocation8]  }
  0x13   :  { %119 = vrot.lane.b32.xlu1 %v95_v5, %s933_s18  ;;  %821 = vset.pattern.permute.xlu2 %v935_v11  ;;  %v89_v14 = vadd.s32 1, %v1030_v13  ;;  %v85_v18 = vadd.s32 4294967295, %v1030_v13  ;;  %vm127_vm2 = vcmp.lt.s32.totalorder %v1030_v13, 127  ;;  %vm107_vm4 = vcmp.lt.s32.totalorder %v1030_v13, 1  ;;  %v61_v42 = vld [vmem:[#allocation3] sm:$0xff]  ;;  %v63_v46 = vld [vmem:[#allocation3 + $0x10] sm:$0xff] }
  0x14   :  { %v64_v47 = vld [vmem:[#allocation3 + $0x18] sm:$0xff]  ;;  %839 = vrcp.f32 %v938_v55  ;;  %vm467_vm14 = vcmask 785408   ;;  %v67_v13 = vld [vmem:[#allocation6 + $0x10] sm:$0xff]  ;;  %s745_s14 = sshll.u32 %s942_s2, 4  ;;  %s747_s3 = sshll.u32 %s1323_s7, 4  ;;  %s746_s14 = int_to_ptr.vmem [resolvable:$true] %s745_s14  ;;  %s748_s3 = int_to_ptr.hbm [resolvable:$true] %s747_s3 }
  0x15   :  { %vm91_vm0 = vcmp.lt.s32.totalorder %v89_v14, 128  ;;  %vm86_vm1 = vcmp.ge.s32.totalorder %v85_v18, 0  ;;  %v68_v34 = vld [vmem:[#allocation6 + $0x18] sm:$0xff] }
  0x16   :  { %v132_v17 = vsel %vm91_vm0, 1, %v935_v11  ;;  %v112_v25 = vsel %vm86_vm1, 1, %v935_v11 }
  0x17   :  { %v133_v19 = vperm.slane %v132_v17, 0  ;;  %v113_v30 = vperm.slane %v112_v25, 0 }
  0x19   :  { %vm1042_vm3 = vcmp.eq.s32.totalorder %v133_v19, 1  ;;  %vm1074_vm5 = vcmp.eq.s32.totalorder %v113_v30, 1 }
  0x1a   :  { %125 = vrot.lane.b32.xlu0 %v98_v9, %s933_s18  ;;  %105 = vrot.lane.b32.xlu2 %v98_v9, %s934_s25  ;;  %v840_v0 = vpop.eup %839 }
  0x1b   :  { %123 = vrot.lane.b32.xlu1 %v96_v10, %s933_s18  ;;  %v257_v12 = vmul.f32 32.0, %v840_v0  ;;  %vm261_vm7 = vweird.f32 %v840_v0 }
  0x1d   :  { %v258_v25 = vsub.f32 1.0, %v257_v12 }
  0x1f   :  { %v259_v30 = vmul.f32 %v840_v0, %v258_v25 }
  0x22   :  { %99 = vrot.lane.b32.xlu0 %v95_v5, %s934_s25  ;;  %141 = vperm.xlu2 %821, %v1071_v32  }
  0x23   :  { %103 = vrot.lane.b32.xlu1 %v96_v10, %s934_s25 }
  0x2a   :  { %146 = vperm.xlu0 %822, %v1038_v21   ;;  %156 = vperm.xlu2 %821, %v1095_v43  }
  0x2b   :  { %151 = vperm.xlu1 %823, %v1066_v31  }
  0x32   :  { %826 = vset.pattern.permute.xlu0 %v936_v41  ;;  %825 = vset.pattern.permute.xlu2 %v937_v44 }
  0x33   :  { %368 = vperm.xlu0 %826, %v1095_v43   ;;  %824 = vset.pattern.permute.xlu1 %v937_v44 }
  0x34   :  { %344 = vperm.xlu1 %824, %v1095_v43   ;;  %340 = vperm.xlu2 %825, %v1066_v31  }
  0x3b   :  { %356 = vperm.xlu0 %826, %v1071_v32  }
  0x3c   :  { %336 = vperm.xlu1 %824, %v1038_v21   ;;  %827 = vset.pattern.permute.xlu2 %v936_v41 }
  0x3d   :  { %364 = vperm.xlu2 %827, %v1066_v31  }
  0x44   :  { %332 = vperm.xlu1 %824, %v1071_v32  }
  0x45   :  { %360 = vperm.xlu2 %827, %v1038_v21  }
  0x6c   :  { %v102_v20 = vpop.permute.xlu2 %101 }
  0x74   :  { %v106_v33 = vpop.permute.xlu2 %105 }
  0x75   :  { %v111_v37 = vsel %vm107_vm4, %v106_v33, %v102_v20  ;;  %v109_v38 = vsel %vm107_vm4, %v102_v20, %v106_v33 }
  0x7c   :  { %v142_v53 = vpop.permute.xlu2 %141 }
  0x84   :  { %v122_v15 = vpop.permute.xlu0 %121  ;;  %v157_v7 = vpop.permute.xlu2 %156 }
  0x85   :  { %v120_v16 = vpop.permute.xlu1 %119 }
  0x8c   :  { %v126_v23 = vpop.permute.xlu0 %125 }
  0x8d   :  { %v124_v24 = vpop.permute.xlu1 %123  ;;  %v129_v26 = vsel %vm127_vm2, %v122_v15, %v126_v23  ;;  %v131_v27 = vsel %vm127_vm2, %v126_v23, %v122_v15 }
  0x8e   :  { %764 = vmatpush.msk.msra.mxu0 %vm1042_vm3, %v129_v26  ;;  %772 = vmatpush.msk.msra.mxu1 %vm1042_vm3, %v131_v27  ;;  %v128_v28 = vsel %vm127_vm2, %v120_v16, %v124_v24  ;;  %v130_v29 = vsel %vm127_vm2, %v124_v24, %v120_v16 }
  0x90   :  { %765 = vmatpush.msk.msra.mxu0 %vm1042_vm3, %v128_v28  ;;  %773 = vmatpush.msk.msra.mxu1 %vm1042_vm3, %v130_v29 }
  0x92   :  { %184 = vmatpush.msra.mxu0 %v97_v4  ;;  %213 = vmatpush.msra.mxu1 %v98_v9 }
  0x94   :  { %185 = vmatpush.msra.mxu0 %v95_v5  ;;  %214 = vmatpush.msra.mxu1 %v96_v10  ;;  %v100_v35 = vpop.permute.xlu0 %99 }
  0x95   :  { %v104_v36 = vpop.permute.xlu1 %103 }
  0x96   :  { %v110_v39 = vsel %vm107_vm4, %v104_v36, %v100_v35  ;;  %v108_v40 = vsel %vm107_vm4, %v100_v35, %v104_v36  ;;  %766 = vmatpush.msk.msra.mxu0 %vm1074_vm5, %v111_v37  ;;  %774 = vmatpush.msk.msra.mxu1 %vm1074_vm5, %v109_v38  ;;  %v260_v38 = vadd.f32 %v840_v0, %v259_v30 }
  0x98   :  { %767 = vmatpush.msk.msra.mxu0 %vm1074_vm5, %v110_v39  ;;  %775 = vmatpush.msk.msra.mxu1 %vm1074_vm5, %v108_v40  ;;  %v1118_v44 = vsel %vm261_vm7, %v840_v0, %v260_v38 }
  0x99   :  { %768 = vmatmul.msk.f32.vlgmr.msra.gmra.mxu0 %vm159_vm6, %v61_v42  ;;  %776 = vmatmul.msk.f32.vlgmr.msra.gmra.mxu1 %vm159_vm6, %v61_v42 }
  0x9c   :  { %v147_v52 = vpop.permute.xlu0 %146 }
  0x9d   :  { %v152_v54 = vpop.permute.xlu1 %151 }
  0xa1   :  { %769 = vmatmul.msk.f32.gmra.mxu0 %vm159_vm6, %v62_v45  ;;  %777 = vmatmul.msk.f32.gmra.mxu1 %vm159_vm6, %v62_v45 }
  0xa9   :  { %770 = vmatmul.msk.f32.gmra.mxu0 %vm159_vm6, %v63_v46  ;;  %778 = vmatmul.msk.f32.gmra.mxu1 %vm159_vm6, %v63_v46 }
  0xb1   :  { %771 = vmatmul.msk.f32.gmra.mxu0 %vm159_vm6, %v64_v47  ;;  %779 = vmatmul.msk.f32.gmra.mxu1 %vm159_vm6, %v64_v47 }
 0x116   :  { %v189_v48 = vpop.f32.mrf.mxu0  ;;  %v218_v49 = vpop.f32.mrf.mxu1 }
 0x117   :  { %v219_v58 = vadd.f32 %v218_v49, %v142_v53  ;;  %v190_v61 = vadd.f32 %v189_v48, %v142_v53 }
 0x119   :  { %v231_v1 = vmax.f32 %v219_v58, 0.0  ;;  %v230_v5 = vmax.f32 %v190_v61, 0.0 }
 0x11e   :  { %v192_v50 = vpop.f32.mrf.mxu0  ;;  %v221_v51 = vpop.f32.mrf.mxu1 }
 0x11f   :  { %v193_v59 = vadd.f32 %v192_v50, %v147_v52  ;;  %v222_v60 = vadd.f32 %v221_v51, %v147_v52 }
 0x121   :  { %v232_v3 = vmax.f32 %v193_v59, 0.0  ;;  %v233_v4 = vmax.f32 %v222_v60, 0.0 }
 0x123   :  { %v238_v15 = vadd.f32 %v232_v3, %v230_v5  ;;  %v247_v16 = vadd.f32 %v233_v4, %v231_v1 }
 0x126   :  { %v195_v56 = vpop.f32.mrf.mxu0  ;;  %v224_v57 = vpop.f32.mrf.mxu1 }
 0x127   :  { %v196_v62 = vadd.f32 %v195_v56, %v152_v54  ;;  %v225_v63 = vadd.f32 %v224_v57, %v152_v54 }
 0x129   :  { %v234_v8 = vmax.f32 %v196_v62, 0.0  ;;  %v235_v9 = vmax.f32 %v225_v63, 0.0 }
 0x12b   :  { %v239_v19 = vadd.f32 %v238_v15, %v234_v8  ;;  %v248_v20 = vadd.f32 %v247_v16, %v235_v9 }
 0x12e   :  { %v198_v10 = vpop.f32.mrf.mxu0  ;;  %v227_v14 = vpop.f32.mrf.mxu1 }
 0x12f   :  { %v199_v17 = vadd.f32 %v198_v10, %v157_v7  ;;  %v228_v18 = vadd.f32 %v227_v14, %v157_v7 }
 0x131   :  { %v236_v23 = vmax.f32 %v199_v17, 0.0  ;;  %v237_v24 = vmax.f32 %v228_v18, 0.0 }
 0x133   :  { %v240_v26 = vadd.f32 %v239_v19, %v236_v23  ;;  %v249_v27 = vadd.f32 %v248_v20, %v237_v24 }
 0x135   :  { %v241_v28 = vrot.slane %v240_v26, 4  ;;  %v250_v29 = vrot.slane %v249_v27, 4 }
 0x137   :  { %v242_v33 = vadd.f32 %v241_v28, %v240_v26  ;;  %v251_v35 = vadd.f32 %v250_v29, %v249_v27  ;;  %v341_v29 = vpop.permute.xlu2 %340 }
 0x139   :  { %v243_v36 = vrot.slane %v242_v33, 2  ;;  %v252_v37 = vrot.slane %v251_v35, 2 }
 0x13b   :  { %v244_v39 = vadd.f32 %v243_v36, %v242_v33  ;;  %v253_v40 = vadd.f32 %v252_v37, %v251_v35  ;;  %v345_v37 = vpop.permute.xlu1 %344 }
 0x13d   :  { %v245_v41 = vrot.slane %v244_v39, 1  ;;  %v254_v42 = vrot.slane %v253_v40, 1 }
 0x13f   :  { %v246_v45 = vadd.f32 %v245_v41, %v244_v39  ;;  %v255_v46 = vadd.f32 %v254_v42, %v253_v40 }
 0x141   :  { %v263_v47 = vmul.f32 %v1118_v44, %v246_v45  ;;  %v264_v48 = vmul.f32 %v1118_v44, %v255_v46 }
 0x143   :  { %v1122_v49 = vsub.f32 %v230_v5, %v263_v47  ;;  %v1124_v50 = vsub.f32 %v232_v3, %v263_v47  ;;  %v269_v51 = vsub.f32 %v234_v8, %v263_v47  ;;  %v1126_v52 = vsub.f32 %v231_v1, %v264_v48 }
 0x144   :  { %v1128_v53 = vsub.f32 %v233_v4, %v264_v48  ;;  %v1130_v54 = vsub.f32 %v235_v9, %v264_v48  ;;  %v271_v55 = vsub.f32 %v236_v23, %v263_v47  ;;  %v272_v58 = vsub.f32 %v237_v24, %v264_v48  ;;  %v365_v47 = vpop.permute.xlu2 %364 }
 0x145   :  { %v273_v56 = vmul.f32 %v1122_v49, %v1122_v49  ;;  %v275_v57 = vmul.f32 %v1124_v50, %v1124_v50  ;;  %v274_v59 = vmul.f32 %v1126_v52, %v1126_v52  ;;  %v277_v61 = vmul.f32 %v269_v51, %v269_v51 }
 0x146   :  { %v276_v60 = vmul.f32 %v1128_v53, %v1128_v53  ;;  %v278_v63 = vmul.f32 %v1130_v54, %v1130_v54  ;;  %v279_v1 = vmul.f32 %v271_v55, %v271_v55  ;;  %v280_v4 = vmul.f32 %v272_v58, %v272_v58 }
 0x147   :  { %v281_v62 = vadd.f32 %v275_v57, %v273_v56 }
 0x148   :  { %v290_v0 = vadd.f32 %v276_v60, %v274_v59 }
 0x149   :  { %v282_v3 = vadd.f32 %v281_v62, %v277_v61  ;;  %v337_v62 = vpop.permute.xlu1 %336 }
 0x14a   :  { %v291_v5 = vadd.f32 %v290_v0, %v278_v63 }
 0x14b   :  { %v283_v7 = vadd.f32 %v282_v3, %v279_v1 }
 0x14c   :  { %v292_v8 = vadd.f32 %v291_v5, %v280_v4 }
 0x14d   :  { %v284_v9 = vrot.slane %v283_v7, 4 }
 0x14e   :  { %v293_v10 = vrot.slane %v292_v8, 4 }
 0x14f   :  { %v285_v12 = vadd.f32 %v284_v9, %v283_v7  ;;  %v369_v7 = vpop.permute.xlu0 %368 }
 0x150   :  { %v294_v14 = vadd.f32 %v293_v10, %v292_v8 }
 0x151   :  { %v286_v15 = vrot.slane %v285_v12, 2 }
 0x152   :  { %v295_v16 = vrot.slane %v294_v14, 2 }
 0x153   :  { %v287_v17 = vadd.f32 %v286_v15, %v285_v12  ;;  %v361_v15 = vpop.permute.xlu2 %360 }
 0x154   :  { %v296_v18 = vadd.f32 %v295_v16, %v294_v14 }
 0x155   :  { %v288_v19 = vrot.slane %v287_v17, 1 }
 0x156   :  { %v297_v20 = vrot.slane %v296_v18, 1 }
 0x157   :  { %v289_v23 = vadd.f32 %v288_v19, %v287_v17  ;;  %v333_v17 = vpop.permute.xlu1 %332 }
 0x158   :  { %v298_v24 = vadd.f32 %v297_v20, %v296_v18 }
 0x159   :  { %v299_v25 = vmul.f32 %v289_v23, %v1118_v44 }
 0x15a   :  { %v300_v26 = vmul.f32 %v298_v24, %v1118_v44 }
 0x15b   :  { %v301_v27 = vadd.f32 0.0001, %v299_v25 }
 0x15c   :  { %v302_v28 = vadd.f32 0.0001, %v300_v26  ;;  %v357_v26 = vpop.permute.xlu0 %356 }
 0x15d   :  { %841 = vrsqrt.f32 %v301_v27  ;;  %vm309_vm10 = vweird.f32 %v301_v27 }
 0x15e   :  { %843 = vrsqrt.f32 %v302_v28  ;;  %vm319_vm12 = vweird.f32 %v302_v28 }
 0x163   :  { %v842_v30 = vpop.eup %841 }
 0x164   :  { %v844_v33 = vpop.eup %843  ;;  %v304_v35 = vmul.f32 %v842_v30, %v301_v27  ;;  %vm310_vm8 = vweird.f32 %v842_v30 }
 0x165   :  { %v314_v36 = vmul.f32 %v844_v33, %v302_v28  ;;  %vm320_vm9 = vweird.f32 %v844_v33  ;;  %vm311_vm11 = vmor %vm309_vm10, %vm310_vm8 }
 0x166   :  { %v305_v38 = vmul.f32 %v842_v30, %v304_v35  ;;  %vm321_vm13 = vmor %vm319_vm12, %vm320_vm9 }
 0x167   :  { %v315_v39 = vmul.f32 %v844_v33, %v314_v36 }
 0x168   :  { %v306_v40 = vmul.f32 0.5, %v305_v38 }
 0x169   :  { %v316_v41 = vmul.f32 0.5, %v315_v39 }
 0x16a   :  { %v307_v42 = vsub.f32 1.5, %v306_v40 }
 0x16b   :  { %v317_v45 = vsub.f32 1.5, %v316_v41 }
 0x16c   :  { %v308_v46 = vmul.f32 %v842_v30, %v307_v42 }
 0x16d   :  { %v318_v48 = vmul.f32 %v844_v33, %v317_v45 }
 0x16e   :  { %v312_v56 = vsel %vm311_vm11, %v842_v30, %v308_v46 }
 0x16f   :  { %v322_v57 = vsel %vm321_vm13, %v844_v33, %v318_v48  ;;  %v329_v59 = vmul.f32 %v312_v56, %v271_v55  ;;  %v327_v60 = vmul.f32 %v312_v56, %v269_v51  ;;  %v325_v5 = vmul.f32 %v312_v56, %v1124_v50 }
 0x170   :  { %v330_v61 = vmul.f32 %v322_v57, %v272_v58  ;;  %v328_v0 = vmul.f32 %v322_v57, %v1130_v54  ;;  %v326_v3 = vmul.f32 %v322_v57, %v1128_v53  ;;  %v323_v53 = vmul.f32 %v312_v56, %v1122_v49 }
 0x171   :  { %v353_v63 = vmul.f32 %v345_v37, %v329_v59  ;;  %v351_v1 = vmul.f32 %v341_v29, %v327_v60  ;;  %v349_v58 = vmul.f32 %v337_v62, %v325_v5  ;;  %v324_v18 = vmul.f32 %v322_v57, %v1126_v52 }
 0x172   :  { %v354_v4 = vmul.f32 %v345_v37, %v330_v61  ;;  %v352_v12 = vmul.f32 %v341_v29, %v328_v0  ;;  %v350_v14 = vmul.f32 %v337_v62, %v326_v3  ;;  %v347_v23 = vmul.f32 %v333_v17, %v323_v53 }
 0x173   :  { %v377_v8 = vadd.f32 %v369_v7, %v353_v63  ;;  %v375_v9 = vadd.f32 %v365_v47, %v351_v1  ;;  %v373_v19 = vadd.f32 %v361_v15, %v349_v58  ;;  %v348_v25 = vmul.f32 %v333_v17, %v324_v18 }
 0x174   :  { %v378_v10 = vadd.f32 %v369_v7, %v354_v4  ;;  %v376_v50 = vadd.f32 %v365_v47, %v352_v12  ;;  %v374_v16 = vadd.f32 %v361_v15, %v350_v14  ;;  %v371_v49 = vadd.f32 %v357_v26, %v347_v23 }
 0x175   :  { %v385_v55 = vmul.f32 %v999_v2, %v377_v8  ;;  %v1149_v51 = vmul.f32 %v999_v2, %v375_v9  ;;  %v381_v27 = vmul.f32 %v999_v2, %v373_v19  ;;  %v372_v28 = vadd.f32 %v357_v26, %v348_v25 }
 0x176   :  { %v386_v54 = vmul.f32 %v1011_v6, %v378_v10  ;;  %v384_v20 = vmul.f32 %v1011_v6, %v376_v50  ;;  %v382_v24 = vmul.f32 %v1011_v6, %v374_v16  ;;  %v379_v52 = vmul.f32 %v999_v2, %v371_v49 }
 0x177   :  { %425 = vrot.lane.b32.xlu1 %v385_v55, %s933_s18  ;;  %423 = vrot.lane.b32.xlu0 %v1149_v51, %s933_s18  ;;  %v380_v29 = vmul.f32 %v1011_v6, %v372_v28  ;;  %v939_v3 = vmov 3   ;;  %v940_v9 = vmov 4   ;;  %v941_v10 = vmov 5  }
 0x178   :  { %433 = vrot.lane.b32.xlu2 %v386_v54, %s933_s18  ;;  %829 = vset.pattern.permute.xlu0 %v939_v3 }
 0x179   :  { %830 = vset.pattern.permute.xlu1 %v939_v3  ;;  %828 = vset.pattern.permute.xlu2 %v939_v3 }
 0x17f   :  { %431 = vrot.lane.b32.xlu1 %v384_v20, %s933_s18  ;;  %429 = vrot.lane.b32.xlu0 %v382_v24, %s933_s18 }
 0x180   :  { %421 = vrot.lane.b32.xlu2 %v381_v27, %s933_s18 }
 0x187   :  { %393 = vrot.lane.b32.xlu0 %v385_v55, %s934_s25  ;;  %419 = vrot.lane.b32.xlu1 %v379_v52, %s933_s18 }
 0x188   :  { %427 = vrot.lane.b32.xlu2 %v380_v29, %s933_s18 }
 0x18f   :  { %399 = vrot.lane.b32.xlu0 %v384_v20, %s934_s25  ;;  %401 = vrot.lane.b32.xlu1 %v386_v54, %s934_s25 }
 0x190   :  { %391 = vrot.lane.b32.xlu2 %v1149_v51, %s934_s25 }
 0x197   :  { %387 = vrot.lane.b32.xlu0 %v379_v52, %s934_s25  ;;  %389 = vrot.lane.b32.xlu1 %v381_v27, %s934_s25 }
 0x198   :  { %397 = vrot.lane.b32.xlu2 %v382_v24, %s934_s25 }
 0x19f   :  { %395 = vrot.lane.b32.xlu1 %v380_v29, %s934_s25  ;;  %456 = vperm.xlu0 %829, %v1038_v21  }
 0x1a0   :  { %452 = vperm.xlu2 %828, %v1071_v32  }
 0x1a7   :  { %460 = vperm.xlu1 %830, %v1066_v31   ;;  %833 = vset.pattern.permute.xlu0 %v941_v10 }
 0x1a8   :  { %669 = vperm.xlu0 %833, %v1095_v43   ;;  %464 = vperm.xlu2 %828, %v1095_v43  }
 0x1af   :  { %831 = vset.pattern.permute.xlu1 %v940_v9 }
 0x1b0   :  { %645 = vperm.xlu1 %831, %v1095_v43   ;;  %657 = vperm.xlu0 %833, %v1071_v32  }
 0x1b1   :  { %832 = vset.pattern.permute.xlu2 %v940_v9 }
 0x1b2   :  { %641 = vperm.xlu2 %832, %v1066_v31  }
 0x1b8   :  { %637 = vperm.xlu1 %831, %v1038_v21   ;;  %836 = vset.pattern.permute.xlu0 %v935_v11 }
 0x1ba   :  { %834 = vset.pattern.permute.xlu2 %v941_v10 }
 0x1bb   :  { %665 = vperm.xlu2 %834, %v1066_v31  }
 0x1c0   :  { %633 = vperm.xlu1 %831, %v1071_v32  }
 0x1c3   :  { %661 = vperm.xlu2 %834, %v1038_v21  }
 0x1c8   :  { %835 = vset.pattern.permute.xlu1 %v935_v11 }
 0x1d2   :  { %v434_v30 = vpop.permute.xlu2 %433 }
 0x1da   :  { %v422_v38 = vpop.permute.xlu2 %421 }
 0x1e2   :  { %v428_v47 = vpop.permute.xlu2 %427 }
 0x1e9   :  { %v426_v33 = vpop.permute.xlu1 %425  ;;  %v424_v35 = vpop.permute.xlu0 %423 }
 0x1ea   :  { %v438_v36 = vsel %vm127_vm2, %v426_v33, %v434_v30  ;;  %v442_v37 = vsel %vm127_vm2, %v434_v30, %v426_v33  ;;  %v392_v60 = vpop.permute.xlu2 %391 }
 0x1eb   :  { %780 = vmatpush.msk.msra.mxu2 %vm1042_vm3, %v438_v36  ;;  %792 = vmatpush.msk.msra.mxu3 %vm1042_vm3, %v442_v37 }
 0x1f1   :  { %v432_v39 = vpop.permute.xlu1 %431  ;;  %v430_v40 = vpop.permute.xlu0 %429 }
 0x1f2   :  { %v437_v41 = vsel %vm127_vm2, %v424_v35, %v432_v39  ;;  %v441_v42 = vsel %vm127_vm2, %v432_v39, %v424_v35  ;;  %v436_v45 = vsel %vm127_vm2, %v422_v38, %v430_v40  ;;  %v440_v46 = vsel %vm127_vm2, %v430_v40, %v422_v38  ;;  %v398_v4 = vpop.permute.xlu2 %397 }
 0x1f3   :  { %781 = vmatpush.msk.msra.mxu2 %vm1042_vm3, %v437_v41  ;;  %793 = vmatpush.msk.msra.mxu3 %vm1042_vm3, %v441_v42 }
 0x1f5   :  { %782 = vmatpush.msk.msra.mxu2 %vm1042_vm3, %v436_v45  ;;  %794 = vmatpush.msk.msra.mxu3 %vm1042_vm3, %v440_v46 }
 0x1f9   :  { %v394_v48 = vpop.permute.xlu0 %393  ;;  %v420_v56 = vpop.permute.xlu1 %419 }
 0x1fa   :  { %v435_v57 = vsel %vm127_vm2, %v420_v56, %v428_v47  ;;  %v439_v59 = vsel %vm127_vm2, %v428_v47, %v420_v56  ;;  %v453_v16 = vpop.permute.xlu2 %452 }
 0x1fb   :  { %783 = vmatpush.msk.msra.mxu2 %vm1042_vm3, %v435_v57  ;;  %795 = vmatpush.msk.msra.mxu3 %vm1042_vm3, %v439_v59 }
 0x1fd   :  { %488 = vmatpush.msra.mxu2 %v385_v55  ;;  %517 = vmatpush.msra.mxu3 %v386_v54  ;;  %v65_v55 = vld [vmem:[#allocation6] sm:$0xff]  ;;  %v66_v54 = vld [vmem:[#allocation6 + $0x8] sm:$0xff] }
 0x1ff   :  { %489 = vmatpush.msra.mxu2 %v1149_v51  ;;  %518 = vmatpush.msra.mxu3 %v384_v20 }
 0x201   :  { %490 = vmatpush.msra.mxu2 %v381_v27  ;;  %519 = vmatpush.msra.mxu3 %v382_v24  ;;  %v402_v61 = vpop.permute.xlu1 %401  ;;  %v400_v62 = vpop.permute.xlu0 %399 }
 0x202   :  { %v410_v63 = vsel %vm107_vm4, %v402_v61, %v394_v48  ;;  %v406_v0 = vsel %vm107_vm4, %v394_v48, %v402_v61  ;;  %v409_v22 = vsel %vm107_vm4, %v400_v62, %v392_v60  ;;  %v405_v1 = vsel %vm107_vm4, %v392_v60, %v400_v62  ;;  %v465_v21 = vpop.permute.xlu2 %464 }
 0x203   :  { %491 = vmatpush.msra.mxu2 %v379_v52  ;;  %520 = vmatpush.msra.mxu3 %v380_v29 }
 0x205   :  { %784 = vmatpush.msk.msra.mxu2 %vm1074_vm5, %v410_v63  ;;  %796 = vmatpush.msk.msra.mxu3 %vm1074_vm5, %v406_v0 }
 0x207   :  { %785 = vmatpush.msk.msra.mxu2 %vm1074_vm5, %v409_v22  ;;  %797 = vmatpush.msk.msra.mxu3 %vm1074_vm5, %v405_v1 }
 0x209   :  { %v390_v5 = vpop.permute.xlu1 %389  ;;  %v388_v12 = vpop.permute.xlu0 %387 }
 0x20a   :  { %v408_v7 = vsel %vm107_vm4, %v398_v4, %v390_v5  ;;  %v404_v8 = vsel %vm107_vm4, %v390_v5, %v398_v4 }
 0x20b   :  { %786 = vmatpush.msk.msra.mxu2 %vm1074_vm5, %v408_v7  ;;  %798 = vmatpush.msk.msra.mxu3 %vm1074_vm5, %v404_v8 }
 0x211   :  { %v396_v14 = vpop.permute.xlu1 %395  ;;  %v457_v53 = vpop.permute.xlu0 %456 }
 0x212   :  { %v407_v51 = vsel %vm107_vm4, %v396_v14, %v388_v12  ;;  %v403_v58 = vsel %vm107_vm4, %v388_v12, %v396_v14 }
 0x213   :  { %787 = vmatpush.msk.msra.mxu2 %vm1074_vm5, %v407_v51  ;;  %799 = vmatpush.msk.msra.mxu3 %vm1074_vm5, %v403_v58  ;;  %vm694_vm5 = vcmask 261120  }
 0x214   :  { %788 = vmatmul.msk.f32.vlgmr.msra.gmra.mxu2 %vm467_vm14, %v65_v55  ;;  %800 = vmatmul.msk.f32.vlgmr.msra.gmra.mxu3 %vm467_vm14, %v65_v55 }
 0x219   :  { %v461_v17 = vpop.permute.xlu1 %460 }
 0x21c   :  { %789 = vmatmul.msk.f32.gmra.mxu2 %vm467_vm14, %v66_v54  ;;  %801 = vmatmul.msk.f32.gmra.mxu3 %vm467_vm14, %v66_v54 }
 0x224   :  { %790 = vmatmul.msk.f32.gmra.mxu2 %vm467_vm14, %v67_v13  ;;  %802 = vmatmul.msk.f32.gmra.mxu3 %vm467_vm14, %v67_v13 }
 0x22c   :  { %791 = vmatmul.msk.f32.gmra.mxu2 %vm467_vm14, %v68_v34  ;;  %803 = vmatmul.msk.f32.gmra.mxu3 %vm467_vm14, %v68_v34 }
 0x297   :  { %v497_v43 = vpop.f32.mrf.mxu2  ;;  %v526_v32 = vpop.f32.mrf.mxu3 }
 0x298   :  { %v498_v23 = vadd.f32 %v497_v43, %v453_v16  ;;  %v527_v24 = vadd.f32 %v526_v32, %v453_v16 }
 0x29a   :  { %v538_v49 = vmax.f32 %v498_v23, 0.0  ;;  %v539_v28 = vmax.f32 %v527_v24, 0.0 }
 0x29f   :  { %v500_v15 = vpop.f32.mrf.mxu2  ;;  %v529_v50 = vpop.f32.mrf.mxu3 }
 0x2a0   :  { %v501_v20 = vadd.f32 %v500_v15, %v457_v53  ;;  %v530_v31 = vadd.f32 %v529_v50, %v457_v53 }
 0x2a2   :  { %v540_v26 = vmax.f32 %v501_v20, 0.0  ;;  %v541_v27 = vmax.f32 %v530_v31, 0.0 }
 0x2a4   :  { %v546_v35 = vadd.f32 %v540_v26, %v538_v49  ;;  %v555_v36 = vadd.f32 %v541_v27, %v539_v28 }
 0x2a7   :  { %v503_v18 = vpop.f32.mrf.mxu2  ;;  %v532_v19 = vpop.f32.mrf.mxu3 }
 0x2a8   :  { %v504_v11 = vadd.f32 %v503_v18, %v461_v17  ;;  %v533_v25 = vadd.f32 %v532_v19, %v461_v17 }
 0x2aa   :  { %v542_v52 = vmax.f32 %v504_v11, 0.0  ;;  %v543_v29 = vmax.f32 %v533_v25, 0.0 }
 0x2ac   :  { %v547_v39 = vadd.f32 %v546_v35, %v542_v52  ;;  %v556_v40 = vadd.f32 %v555_v36, %v543_v29  ;;  %v646_v36 = vpop.permute.xlu1 %645 }
 0x2af   :  { %v506_v30 = vpop.f32.mrf.mxu2  ;;  %v535_v33 = vpop.f32.mrf.mxu3 }
 0x2b0   :  { %v507_v37 = vadd.f32 %v506_v30, %v465_v21  ;;  %v536_v38 = vadd.f32 %v535_v33, %v465_v21 }
 0x2b2   :  { %v544_v41 = vmax.f32 %v507_v37, 0.0  ;;  %v545_v42 = vmax.f32 %v536_v38, 0.0  ;;  %v70_v37 = vld [vmem:[#allocation2] sm:$0x1]  ;;  %v642_v38 = vpop.permute.xlu2 %641 }
 0x2b3   :  { %690 = vperm.xlu1 %835, %v70_v37  }
 0x2b4   :  { %v548_v45 = vadd.f32 %v547_v39, %v544_v41  ;;  %v557_v46 = vadd.f32 %v556_v40, %v545_v42 }
 0x2b6   :  { %v549_v47 = vrot.slane %v548_v45, 4  ;;  %v558_v48 = vrot.slane %v557_v46, 4 }
 0x2b8   :  { %v550_v56 = vadd.f32 %v549_v47, %v548_v45  ;;  %v559_v57 = vadd.f32 %v558_v48, %v557_v46  ;;  %v638_v48 = vpop.permute.xlu1 %637 }
 0x2ba   :  { %v551_v59 = vrot.slane %v550_v56, 2  ;;  %v560_v60 = vrot.slane %v559_v57, 2 }
 0x2bc   :  { %v552_v61 = vadd.f32 %v551_v59, %v550_v56  ;;  %v561_v62 = vadd.f32 %v560_v60, %v559_v57 }
 0x2be   :  { %v553_v63 = vrot.slane %v552_v61, 1  ;;  %v562_v0 = vrot.slane %v561_v62, 1 }
 0x2c0   :  { %v554_v22 = vadd.f32 %v553_v63, %v552_v61  ;;  %v563_v1 = vadd.f32 %v562_v0, %v561_v62  ;;  %v670_v61 = vpop.permute.xlu0 %669 }
 0x2c2   :  { %v564_v3 = vmul.f32 %v554_v22, %v1118_v44  ;;  %v565_v4 = vmul.f32 %v563_v1, %v1118_v44 }
 0x2c4   :  { %v1266_v5 = vsub.f32 %v538_v49, %v564_v3  ;;  %v1268_v7 = vsub.f32 %v540_v26, %v564_v3  ;;  %v1270_v8 = vsub.f32 %v542_v52, %v564_v3  ;;  %v1272_v9 = vsub.f32 %v539_v28, %v565_v4 }
 0x2c5   :  { %v1274_v10 = vsub.f32 %v541_v27, %v565_v4  ;;  %v1276_v12 = vsub.f32 %v543_v29, %v565_v4  ;;  %v572_v14 = vsub.f32 %v544_v41, %v564_v3  ;;  %v573_v58 = vsub.f32 %v545_v42, %v565_v4 }
 0x2c6   :  { %v574_v55 = vmul.f32 %v1266_v5, %v1266_v5  ;;  %v576_v51 = vmul.f32 %v1268_v7, %v1268_v7  ;;  %v575_v54 = vmul.f32 %v1272_v9, %v1272_v9  ;;  %v578_v34 = vmul.f32 %v1270_v8, %v1270_v8 }
 0x2c7   :  { %v577_v13 = vmul.f32 %v1274_v10, %v1274_v10  ;;  %v579_v32 = vmul.f32 %v1276_v12, %v1276_v12  ;;  %v580_v50 = vmul.f32 %v572_v14, %v572_v14  ;;  %v581_v16 = vmul.f32 %v573_v58, %v573_v58 }
 0x2c8   :  { %v582_v43 = vadd.f32 %v576_v51, %v574_v55 }
 0x2c9   :  { %v591_v15 = vadd.f32 %v577_v13, %v575_v54 }
 0x2ca   :  { %v583_v53 = vadd.f32 %v582_v43, %v578_v34 }
 0x2cb   :  { %v592_v17 = vadd.f32 %v591_v15, %v579_v32 }
 0x2cc   :  { %v584_v18 = vadd.f32 %v583_v53, %v580_v50 }
 0x2cd   :  { %v593_v19 = vadd.f32 %v592_v17, %v581_v16 }
 0x2ce   :  { %v585_v20 = vrot.slane %v584_v18, 4 }
 0x2cf   :  { %v594_v31 = vrot.slane %v593_v19, 4 }
 0x2d0   :  { %v586_v23 = vadd.f32 %v585_v20, %v584_v18  ;;  %v658_v20 = vpop.permute.xlu0 %657 }
 0x2d1   :  { %v595_v24 = vadd.f32 %v594_v31, %v593_v19 }
 0x2d2   :  { %v587_v11 = vrot.slane %v586_v23, 2 }
 0x2d3   :  { %v596_v25 = vrot.slane %v595_v24, 2 }
 0x2d4   :  { %v588_v26 = vadd.f32 %v587_v11, %v586_v23 }
 0x2d5   :  { %v597_v27 = vadd.f32 %v596_v25, %v595_v24  ;;  %v849_v25 = vld [vmem:[%s1317_s1] ss:$0 sm:$0xff] }
 0x2d6   :  { %v589_v49 = vrot.slane %v588_v26, 1 }
 0x2d7   :  { %v598_v28 = vrot.slane %v597_v27, 1 }
 0x2d8   :  { %v590_v21 = vadd.f32 %v589_v49, %v588_v26 }
 0x2d9   :  { %v599_v52 = vadd.f32 %v598_v28, %v597_v27  ;;  %v69_v28 = vld [vmem:[%s1321_s5] sm:$0x1] }
 0x2da   :  { %v600_v29 = vmul.f32 %v590_v21, %v1118_v44 }
 0x2db   :  { %v601_v30 = vmul.f32 %v599_v52, %v1118_v44  ;;  %v666_v44 = vpop.permute.xlu2 %665 }
 0x2dc   :  { %v602_v33 = vadd.f32 0.0001, %v600_v29 }
 0x2dd   :  { %v603_v35 = vadd.f32 0.0001, %v601_v30 }
 0x2de   :  { %845 = vrsqrt.f32 %v602_v33  ;;  %vm610_vm1 = vweird.f32 %v602_v33 }
 0x2df   :  { %847 = vrsqrt.f32 %v603_v35  ;;  %vm620_vm3 = vweird.f32 %v603_v35 }
 0x2e4   :  { %v846_v39 = vpop.eup %845 }
 0x2e5   :  { %v848_v40 = vpop.eup %847  ;;  %v605_v41 = vmul.f32 %v846_v39, %v602_v33  ;;  %vm611_vm15 = vweird.f32 %v846_v39 }
 0x2e6   :  { %v615_v42 = vmul.f32 %v848_v40, %v603_v35  ;;  %vm621_vm0 = vweird.f32 %v848_v40  ;;  %vm612_vm2 = vmor %vm610_vm1, %vm611_vm15 }
 0x2e7   :  { %v606_v45 = vmul.f32 %v846_v39, %v605_v41  ;;  %vm622_vm4 = vmor %vm620_vm3, %vm621_vm0 }
 0x2e8   :  { %v616_v46 = vmul.f32 %v848_v40, %v615_v42 }
 0x2e9   :  { %v607_v47 = vmul.f32 0.5, %v606_v45 }
 0x2ea   :  { %v617_v56 = vmul.f32 0.5, %v616_v46 }
 0x2eb   :  { %v608_v57 = vsub.f32 1.5, %v607_v47 }
 0x2ec   :  { %v618_v59 = vsub.f32 1.5, %v617_v56 }
 0x2ed   :  { %v609_v60 = vmul.f32 %v846_v39, %v608_v57 }
 0x2ee   :  { %v619_v62 = vmul.f32 %v848_v40, %v618_v59 }
 0x2ef   :  { %v613_v63 = vsel %vm612_vm2, %v846_v39, %v609_v60 }
 0x2f0   :  { %v623_v0 = vsel %vm622_vm4, %v848_v40, %v619_v62  ;;  %v630_v22 = vmul.f32 %v613_v63, %v572_v14  ;;  %v628_v1 = vmul.f32 %v613_v63, %v1270_v8  ;;  %v626_v3 = vmul.f32 %v613_v63, %v1268_v7  ;;  %v634_v14 = vpop.permute.xlu1 %633 }
 0x2f1   :  { %v631_v4 = vmul.f32 %v623_v0, %v573_v58  ;;  %v629_v55 = vmul.f32 %v623_v0, %v1276_v12  ;;  %v627_v51 = vmul.f32 %v623_v0, %v1274_v10  ;;  %v624_v54 = vmul.f32 %v613_v63, %v1266_v5  ;;  %v662_v12 = vpop.permute.xlu2 %661 }
 0x2f2   :  { %v654_v13 = vmul.f32 %v646_v36, %v630_v22  ;;  %v652_v34 = vmul.f32 %v642_v38, %v628_v1  ;;  %v650_v43 = vmul.f32 %v638_v48, %v626_v3  ;;  %v625_v32 = vmul.f32 %v623_v0, %v1272_v9 }
 0x2f3   :  { %v655_v15 = vmul.f32 %v646_v36, %v631_v4  ;;  %v653_v50 = vmul.f32 %v642_v38, %v629_v55  ;;  %v651_v53 = vmul.f32 %v638_v48, %v627_v51  ;;  %v648_v17 = vmul.f32 %v634_v14, %v624_v54 }
 0x2f4   :  { %v676_v16 = vadd.f32 %v666_v44, %v652_v34  ;;  %v678_v8 = vadd.f32 %v670_v61, %v654_v13  ;;  %v649_v18 = vmul.f32 %v634_v14, %v625_v32  ;;  %v674_v19 = vadd.f32 %v662_v12, %v650_v43 }
 0x2f5   :  { %v677_v7 = vadd.f32 %v666_v44, %v653_v50  ;;  %v679_v58 = vadd.f32 %v670_v61, %v655_v15  ;;  %v675_v5 = vadd.f32 %v662_v12, %v651_v53  ;;  %v672_v23 = vadd.f32 %v658_v20, %v648_v17 }
 0x2f6   :  { %v686_v10 = vmul.f32 %v999_v2, %v678_v8  ;;  %v684_v9 = vmul.f32 %v999_v2, %v676_v16  ;;  %v673_v24 = vadd.f32 %v658_v20, %v649_v18  ;;  %v682_v26 = vmul.f32 %v849_v25, %v674_v19  ;;  %v850_v2 = vld [vmem:[%s1317_s1 + $0x1] ss:$0 sm:$0xff]  ;;  %s943_s1 = smov 16  }
 0x2f7   :  { %v687_v31 = vmul.f32 %v1011_v6, %v679_v58  ;;  %v685_v11 = vmul.f32 %v1011_v6, %v677_v7  ;;  %v683_v27 = vmul.f32 %v1011_v6, %v675_v5  ;;  %v680_v49 = vmul.f32 %v849_v25, %v672_v23 }
 0x2f8   :  { %710 = vmatpush.msrb.mxu0 %v686_v10  ;;  %v681_v21 = vmul.f32 %v850_v2, %v673_v24 }
 0x2f9   :  { %730 = vmatpush.msrb.mxu1 %v687_v31 }
 0x2fa   :  { %711 = vmatpush.msrb.mxu0 %v684_v9 }
 0x2fb   :  { %731 = vmatpush.msrb.mxu1 %v685_v11 }
 0x2fc   :  { %712 = vmatpush.msrb.mxu0 %v682_v26 }
 0x2fd   :  { %732 = vmatpush.msrb.mxu1 %v683_v27 }
 0x2fe   :  { %713 = vmatpush.msrb.mxu0 %v680_v49 }
 0x2ff   :  { %733 = vmatpush.msrb.mxu1 %v681_v21  ;;  %804 = vmatmul.msk.f32.vlgmr.msrb.gmra.mxu0 %vm694_vm5, %v69_v28 }
 0x300   :  { %805 = vmatmul.msk.f32.vlgmr.msrb.gmra.mxu1 %vm694_vm5, %v69_v28 }
 0x325   :  { %v691_v52 = vpop.permute.xlu1 %690 }
 0x326   :  { %v693_v29 = vperm.slane %v691_v52, 0 }
 0x37c   :  { %v715_v6 = vpop.f32.mrf.mxu0 }
 0x37d   :  { %v716_v30 = vadd.f32 %v715_v6, %v693_v29  ;;  %v735_v33 = vpop.f32.mrf.mxu1 }
 0x37e   :  { %v736_v35 = vadd.f32 %v735_v33, %v693_v29 }
 0x37f   :  { %738 = vst [vmem:[#allocation8] sm:$0x1] %v716_v30 }
 0x380   :  { %740 = vst [vmem:[#allocation8 + $0x1] sm:$0x1] %v736_v35 }
 0x381   :  { %753 = dma.vmem_to_hbm [thread:$0]  %s746_s14, 32, %s748_s3, [#allocation5], %s943_s1, %s943_s1, %s934_s25  }
 0x382   :  { %927 = dma.done.wait [#allocation5], 32  }
 0x383   :  { %928 = vsyncadd [#allocation5], 4294967264 }
 0x384   :  { %758 = vsyncpa [#allocation4], 1 }
 0x385   :  { %759 = vsyncpa [#allocation7], 1 }
 0x386   :  { %760 = vsyncpa [#allocation5], 1 }

</bundles_post_ra>
